<compile_context>
chip_gen: v6e
topology: v6e:2x2x1
jax: 0.10.0
libtpu: 0.0.40
codegen_flags: <defaults>
</compile_context>

<pallas_src>
import functools

import jax
import jax.numpy as jnp
from jax.experimental import pallas as pl
from jax.experimental.pallas import tpu as pltpu


# -----------------------------------------------------------------------------
# Fused Pallas kernel: folded-chain matmul -> light_dense -> fused heads
# -----------------------------------------------------------------------------
def _soilnet_fused_kernel(
    pcols_ref,        # (B, 27)     spatially pooled im2col patches, f32
    xlight_ref,       # (B, 1)      f32
    w_img_ref,        # (27, 1280)  bf16  -- whole conv chain folded offline
    b_img_ref,        # (1, 1280)   f32
    w_light_ref,      # (1, 32)     f32
    b_light_ref,      # (1, 32)     f32
    w_head_img_ref,   # (27, 256)   bf16  -- head-1 img part folded through chain
    w_h1_light_ref,   # (32, 256)   bf16
    b_h1_ref,         # (1, 256)    f32
    w_h2_ref,         # (256, 128)  bf16  -- block-diag [reg | cls], lane-padded
    b_h2_ref,         # (1, 128)    f32
    concat_ref,       # out: (B, 1312)  [img_feat(1280) | light_feat(32)]
    heads_ref,        # out: (B, 128)   [reg(2) | cls(num_classes) | zero pad]
):
    f32 = jnp.float32
    bf16 = jnp.bfloat16

    def dot(a, b):
        return jnp.dot(a, b, preferred_element_type=f32)

    pc = pcols_ref[...].astype(bf16)                               # (B, 27)

    # img_feat = GAP(final_conv(chain(initial_conv(x)))), all folded into a
    # single (27, 1280) matmul.  TODO(synk): the chain contains linear 1x1
    # stand-ins for the pretrained timm backbones.
    img = dot(pc, w_img_ref[...]) + b_img_ref[...]                 # (B, 1280)

    # light_dense: Linear(1, 32) + ReLU.  K == 1 -> VPU broadcast multiply.
    light = jnp.maximum(
        xlight_ref[...] * w_light_ref[...] + b_light_ref[...], 0.0)  # (B, 32)

    # x_concat emitted directly: lane-dense 1280-wide store + one 32-wide
    # masked store at a 128-aligned lane offset.
    concat_ref[:, :1280] = img
    concat_ref[:, 1280:] = light

    # Fused reg/cls heads, layer 1 (split-K): the img part consumes
    # pooled_cols directly via the pre-folded (27, 256) weight.
    h1 = (dot(pc, w_head_img_ref[...])
          + dot(light.astype(bf16), w_h1_light_ref[...])
          + b_h1_ref[...])
    h1 = jnp.maximum(h1, 0.0)                                      # (B, 256)

    # Fused heads, layer 2: block-diagonal weight, N padded to 128 lanes.
    heads_ref[...] = dot(h1.astype(bf16), w_h2_ref[...]) + b_h2_ref[...]


def soilnet_fused_call(pooled_cols, x_light, kp):
    B = pooled_cols.shape[0]
    vmem = pl.BlockSpec(memory_space=pltpu.MemorySpace.VMEM)
    args = (
        pooled_cols, x_light,
        kp["w_img"], kp["b_img"],
        kp["w_light"], kp["b_light"],
        kp["w_head_img"], kp["w_h1_light"], kp["b_h1"],
        kp["w_h2"], kp["b_h2"],
    )
    out_shape = (
        jax.ShapeDtypeStruct((B, 1312), jnp.float32),   # x_concat
        jax.ShapeDtypeStruct((B, 128), jnp.float32),    # padded [reg | cls]
    )
    return pl.pallas_call(
        _soilnet_fused_kernel,
        out_shape=out_shape,
        in_specs=[vmem] * len(args),
        out_specs=(vmem, vmem),
    )(*args)


# -----------------------------------------------------------------------------
# Glue: im2col for the 3x3 / pad-1 initial conv
# -----------------------------------------------------------------------------
def _im2col_3x3(x_nhwc):
    B, H, W, Cin = x_nhwc.shape
    xp = jnp.pad(x_nhwc, ((0, 0), (1, 1), (1, 1), (0, 0)))
    patches = [xp[:, kh:kh + H, kw:kw + W, :] for kh in range(3) for kw in range(3)]
    return jnp.concatenate(patches, axis=-1)            # (B, H, W, 9*Cin)


# -----------------------------------------------------------------------------
# Parameter initialization (deterministic, synthetic; PyTorch layouts)
# -----------------------------------------------------------------------------
def init_params(num_classes, key):
    keys = jax.random.split(key, 16)
    k = iter(keys)

    def conv_w(shape):
        fan_in = shape[1] * shape[2] * shape[3]
        return jax.random.normal(next(k), shape, jnp.float32) / jnp.sqrt(fan_in)

    def lin_w(out_f, in_f):
        return jax.random.normal(next(k), (out_f, in_f), jnp.float32) / jnp.sqrt(in_f)

    p = {}
    p["initial_conv_w"] = conv_w((32, 3, 3, 3))         # nn.Conv2d(3, 32, 3, padding=1)
    p["initial_conv_b"] = jnp.zeros((32,), jnp.float32)
    p["mnv2_block1_w"] = conv_w((32, 32, 1, 1))         # TODO(synk) backbone stand-in
    p["channel_adapter_w"] = conv_w((16, 32, 1, 1))     # nn.Conv2d(32, 16, 1, bias=False)
    p["mobilevit_w"] = conv_w((256, 16, 1, 1))          # TODO(synk) backbone stand-in
    p["mvit_to_mnv2_w"] = conv_w((32, 256, 1, 1))       # nn.Conv2d(256, 32, 1, bias=False)
    p["mnv2_block2_w"] = conv_w((320, 32, 1, 1))        # TODO(synk) backbone stand-in
    p["final_conv_w"] = conv_w((1280, 320, 1, 1))       # nn.Conv2d(320, 1280, 1)
    p["final_conv_b"] = jnp.zeros((1280,), jnp.float32)
    p["light_w"] = lin_w(32, 1)                         # Linear(1, 32)
    p["light_b"] = jnp.zeros((32,), jnp.float32)
    p["reg_w1"] = lin_w(128, 1280 + 32)                 # reg_head
    p["reg_b1"] = jnp.zeros((128,), jnp.float32)
    p["reg_w2"] = lin_w(2, 128)
    p["reg_b2"] = jnp.zeros((2,), jnp.float32)
    p["cls_w1"] = lin_w(128, 1280 + 32)                 # cls_head
    p["cls_b1"] = jnp.zeros((128,), jnp.float32)
    p["cls_w2"] = lin_w(num_classes, 128)
    p["cls_b2"] = jnp.zeros((num_classes,), jnp.float32)
    return p


def fuse_params(p, num_classes):
    """One-time offline folding to kernel-ready weights.

    * Folds the whole linear 1x1-conv chain (backbone stand-ins + adapters +
      final_conv) into one (27, 1280) matrix + (1, 1280) bias -- exact
      because every folded op is linear.
    * Folds the img part of the fused head layer 1 through that chain
      -> (27, 256), and its bias contribution into b_h1.
    * Casts large weights to bf16 (MXU-native); biases stay f32.
    Hoisted out of the jitted forward so no transposes / folds run per call.
    """
    f32, bf16 = jnp.float32, jnp.bfloat16

    def c1w(w_oihw):                                    # (Cout, Cin, 1, 1) -> (Cin, Cout)
        return jnp.transpose(w_oihw[:, :, 0, 0], (1, 0)).astype(f32)

    w_init = jnp.transpose(p["initial_conv_w"], (2, 3, 1, 0)).reshape(27, 32).astype(f32)
    b_init = p["initial_conv_b"].reshape(1, 32).astype(f32)

    # Linear chain (all folds in f32; exact).
    chain = c1w(p["mnv2_block1_w"])                     # (32, 32)  TODO(synk) stand-in
    chain = chain @ c1w(p["channel_adapter_w"])         # (32, 16)
    chain = chain @ c1w(p["mobilevit_w"])               # (32, 256) TODO(synk) stand-in
    chain = chain @ c1w(p["mvit_to_mnv2_w"])            # (32, 32)
    chain = chain @ c1w(p["mnv2_block2_w"])             # (32, 320) TODO(synk) stand-in
    chain = chain @ c1w(p["final_conv_w"])              # (32, 1280)

    w_img = w_init @ chain                              # (27, 1280)
    b_img = b_init @ chain + p["final_conv_b"].reshape(1, 1280).astype(f32)

    # Fused head layer 1: columns = [reg(128) | cls(128)], split-K at 1280;
    # img part folded through w_img so the (1280, 256) weight never ships.
    w_h1 = jnp.concatenate(
        [jnp.transpose(p["reg_w1"]), jnp.transpose(p["cls_w1"])], axis=1).astype(f32)
    w_h1_img, w_h1_light = w_h1[:1280], w_h1[1280:]
    w_head_img = w_img @ w_h1_img                       # (27, 256)
    b_h1 = (jnp.concatenate([p["reg_b1"], p["cls_b1"]]).reshape(1, 256).astype(f32)
            + b_img @ w_h1_img)

    # Fused head layer 2: block-diagonal, output padded to 128 lanes.
    head_pad = 128
    assert 2 + num_classes <= head_pad
    w_h2 = jnp.zeros((256, head_pad), f32)
    w_h2 = w_h2.at[:128, 0:2].set(jnp.transpose(p["reg_w2"]).astype(f32))
    w_h2 = w_h2.at[128:, 2:2 + num_classes].set(jnp.transpose(p["cls_w2"]).astype(f32))
    b_h2 = jnp.zeros((1, head_pad), f32)
    b_h2 = b_h2.at[0, 0:2].set(p["reg_b2"].astype(f32))
    b_h2 = b_h2.at[0, 2:2 + num_classes].set(p["cls_b2"].astype(f32))

    return {
        "w_img": w_img.astype(bf16),                    # ~69 KB
        "b_img": b_img,
        "w_light": jnp.transpose(p["light_w"]).astype(f32),   # (1, 32)
        "b_light": p["light_b"].reshape(1, 32).astype(f32),
        "w_head_img": w_head_img.astype(bf16),          # ~14 KB
        "w_h1_light": w_h1_light.astype(bf16),          # ~16 KB
        "b_h1": b_h1,
        "w_h2": w_h2.astype(bf16),                      # ~64 KB
        "b_h2": b_h2,
    }


# -----------------------------------------------------------------------------
# Forward pass (mirrors SoilNetDualHead.forward) -- ONE pallas_call
# -----------------------------------------------------------------------------
def soilnet_forward(kparams, x_img_nchw, x_light, num_classes):
    x = jnp.transpose(x_img_nchw, (0, 2, 3, 1)).astype(jnp.float32)  # NCHW -> NHWC
    B, H, W, Cin = x.shape
    # GAP commuted ahead of the (linear) conv chain and reassociated into the
    # wrapper: mean over spatial of the im2col patches -> (B, 27).  Exact for
    # H, W divisible by 8 (avg_pool(4) . avg_pool(2) . AdaptiveAvgPool(1)).
    pooled_cols = _im2col_3x3(x).reshape(B, H * W, 9 * Cin).mean(axis=1)

    x_concat, heads = soilnet_fused_call(
        pooled_cols, x_light.astype(jnp.float32), kparams)

    reg_out = heads[:, :2]
    cls_out = heads[:, 2:2 + num_classes]
    return reg_out, cls_out, x_concat


# -----------------------------------------------------------------------------
# Pure-JAX unfused reference (layer-by-layer, original op order) for checking
# -----------------------------------------------------------------------------
def reference_forward(p, x_img_nchw, x_light):
    x = jnp.transpose(x_img_nchw, (0, 2, 3, 1)).astype(jnp.float32)
    B, H, W, _ = x.shape
    cols = _im2col_3x3(x)
    w = jnp.transpose(p["initial_conv_w"], (2, 3, 1, 0)).reshape(27, 32)
    x = cols @ w + p["initial_conv_b"]

    def pool(t, f):
        b, h, w_, c = t.shape
        return t.reshape(b, h // f, f, w_ // f, f, c).mean(axis=(2, 4))

    def c1(t, w_oihw):
        return t @ jnp.transpose(w_oihw[:, :, 0, 0], (1, 0))

    x = pool(x, 4); x = c1(x, p["mnv2_block1_w"])        # TODO(synk) stand-in
    x = c1(x, p["channel_adapter_w"])
    x = pool(x, 2); x = c1(x, p["mobilevit_w"])          # TODO(synk) stand-in
    x = c1(x, p["mvit_to_mnv2_w"])
    x = c1(x, p["mnv2_block2_w"])                        # TODO(synk) stand-in
    x = c1(x, p["final_conv_w"]) + p["final_conv_b"]
    img = x.mean(axis=(1, 2))                            # AdaptiveAvgPool2d + flatten
    light = jax.nn.relu(x_light @ jnp.transpose(p["light_w"]) + p["light_b"])
    xc = jnp.concatenate([img, light], axis=1)
    h = jax.nn.relu(xc @ jnp.transpose(p["reg_w1"]) + p["reg_b1"])
    reg = h @ jnp.transpose(p["reg_w2"]) + p["reg_b2"]
    h = jax.nn.relu(xc @ jnp.transpose(p["cls_w1"]) + p["cls_b1"])
    cls = h @ jnp.transpose(p["cls_w2"]) + p["cls_b2"]
    return reg, cls, xc


# -----------------------------------------------------------------------------
# Main
# -----------------------------------------------------------------------------
if __name__ == "__main__":
    num_classes = 5
    B, C_in, H, W = 2, 3, 16, 16

    key = jax.random.PRNGKey(0)
    k_img, k_light, k_params = jax.random.split(key, 3)

    x_img = jax.random.normal(k_img, (B, C_in, H, W), jnp.float32)   # NCHW
    x_light = jax.random.uniform(k_light, (B, 1), jnp.float32)

    params = init_params(num_classes, k_params)
    kparams = fuse_params(params, num_classes)   # one-time, outside jit

    fwd = jax.jit(functools.partial(soilnet_forward, num_classes=num_classes))
    reg_out, cls_out, x_concat = fwd(kparams, x_img, x_light)
    jax.block_until_ready((reg_out, cls_out, x_concat))

    assert reg_out.shape == (B, 2), reg_out.shape
    assert cls_out.shape == (B, num_classes), cls_out.shape
    assert x_concat.shape == (B, 1280 + 32), x_concat.shape

    # Sanity-check the fused/folded bf16 kernel against the unfused f32
    # reference.  Tolerance sized for bf16 weights (~0.4% per rounding).
    ref_reg, ref_cls, ref_xc = reference_forward(params, x_img, x_light)

    def rel_err(a, b):
        return float(jnp.linalg.norm(a - b) / (jnp.linalg.norm(b) + 1e-12))

    tol = 3e-2
    assert rel_err(x_concat, ref_xc) < tol, rel_err(x_concat, ref_xc)
    assert rel_err(reg_out, ref_reg) < tol, rel_err(reg_out, ref_reg)
    assert rel_err(cls_out, ref_cls) < tol, rel_err(cls_out, ref_cls)

    print("KERNEL_OK")
</pallas_src>

<mosaic_0001>
module attributes {stable_mosaic.version = 11 : i64} {
  func.func @_soilnet_fused_kernel(%arg0: memref<2x27xf32, #tpu.memory_space<vmem>>, %arg1: memref<2x1xf32, #tpu.memory_space<vmem>>, %arg2: memref<27x1280xbf16, #tpu.memory_space<vmem>>, %arg3: memref<1x1280xf32, #tpu.memory_space<vmem>>, %arg4: memref<1x32xf32, #tpu.memory_space<vmem>>, %arg5: memref<1x32xf32, #tpu.memory_space<vmem>>, %arg6: memref<27x256xbf16, #tpu.memory_space<vmem>>, %arg7: memref<32x256xbf16, #tpu.memory_space<vmem>>, %arg8: memref<1x256xf32, #tpu.memory_space<vmem>>, %arg9: memref<256x128xbf16, #tpu.memory_space<vmem>>, %arg10: memref<1x128xf32, #tpu.memory_space<vmem>>, %arg11: memref<2x1312xf32, #tpu.memory_space<vmem>>, %arg12: memref<2x128xf32, #tpu.memory_space<vmem>>) attributes {dimension_semantics = [], scalar_prefetch = 0 : i64, scratch_operands = 0 : i64, tpu.core_type = #tpu.core_type<tc>} {
    %c0 = arith.constant 0 : index
    %c0_0 = arith.constant 0 : index
    %0 = vector.load %arg0[%c0, %c0_0] : memref<2x27xf32, #tpu.memory_space<vmem>>, vector<2x27xf32>
    %1 = arith.truncf %0 : vector<2x27xf32> to vector<2x27xbf16>
    %c0_1 = arith.constant 0 : index
    %c0_2 = arith.constant 0 : index
    %2 = vector.load %arg2[%c0_1, %c0_2] : memref<27x1280xbf16, #tpu.memory_space<vmem>>, vector<27x1280xbf16>
    %cst = arith.constant dense<0.000000e+00> : vector<2x1280xf32>
    %3 = tpu.matmul %1, %2, %cst {dimension_numbers = #tpu.dot_dimension_numbers<[1], [0], [0], [1], [0, 0, 1, 1], [], []>} : vector<2x27xbf16>, vector<27x1280xbf16>, vector<2x1280xf32> -> vector<2x1280xf32>
    %c0_3 = arith.constant 0 : index
    %c0_4 = arith.constant 0 : index
    %4 = vector.load %arg3[%c0_3, %c0_4] : memref<1x1280xf32, #tpu.memory_space<vmem>>, vector<1x1280xf32>
    %5 = vector.broadcast %4 : vector<1x1280xf32> to vector<2x1280xf32>
    %6 = arith.addf %3, %5 : vector<2x1280xf32>
    %c0_5 = arith.constant 0 : index
    %c0_6 = arith.constant 0 : index
    %7 = vector.load %arg1[%c0_5, %c0_6] : memref<2x1xf32, #tpu.memory_space<vmem>>, vector<2x1xf32>
    %c0_7 = arith.constant 0 : index
    %c0_8 = arith.constant 0 : index
    %8 = vector.load %arg4[%c0_7, %c0_8] : memref<1x32xf32, #tpu.memory_space<vmem>>, vector<1x32xf32>
    %9 = vector.broadcast %7 : vector<2x1xf32> to vector<2x32xf32>
    %10 = vector.broadcast %8 : vector<1x32xf32> to vector<2x32xf32>
    %11 = arith.mulf %9, %10 : vector<2x32xf32>
    %c0_9 = arith.constant 0 : index
    %c0_10 = arith.constant 0 : index
    %12 = vector.load %arg5[%c0_9, %c0_10] : memref<1x32xf32, #tpu.memory_space<vmem>>, vector<1x32xf32>
    %13 = vector.broadcast %12 : vector<1x32xf32> to vector<2x32xf32>
    %14 = arith.addf %11, %13 : vector<2x32xf32>
    %cst_11 = arith.constant 0.000000e+00 : f32
    %15 = vector.broadcast %cst_11 : f32 to vector<2x32xf32>
    %16 = arith.maximumf %14, %15 : vector<2x32xf32>
    %c0_12 = arith.constant 0 : index
    %c0_13 = arith.constant 0 : index
    %17 = vector.load %arg11[%c0_12, %c0_13] : memref<2x1312xf32, #tpu.memory_space<vmem>>, vector<2x1280xf32>
    tpu.vector_store %arg11[%c0_12, %c0_13], %6 {strides = array<i32>} : memref<2x1312xf32, #tpu.memory_space<vmem>>, vector<2x1280xf32>,
    %c0_14 = arith.constant 0 : index
    %c1280 = arith.constant 1280 : index
    %18 = vector.load %arg11[%c0_14, %c1280] : memref<2x1312xf32, #tpu.memory_space<vmem>>, vector<2x32xf32>
    tpu.vector_store %arg11[%c0_14, %c1280], %16 {strides = array<i32>} : memref<2x1312xf32, #tpu.memory_space<vmem>>, vector<2x32xf32>,
    %c0_15 = arith.constant 0 : index
    %c0_16 = arith.constant 0 : index
    %19 = vector.load %arg6[%c0_15, %c0_16] : memref<27x256xbf16, #tpu.memory_space<vmem>>, vector<27x256xbf16>
    %cst_17 = arith.constant dense<0.000000e+00> : vector<2x256xf32>
    %20 = tpu.matmul %1, %19, %cst_17 {dimension_numbers = #tpu.dot_dimension_numbers<[1], [0], [0], [1], [0, 0, 1, 1], [], []>} : vector<2x27xbf16>, vector<27x256xbf16>, vector<2x256xf32> -> vector<2x256xf32>
    %21 = arith.truncf %16 : vector<2x32xf32> to vector<2x32xbf16>
    %c0_18 = arith.constant 0 : index
    %c0_19 = arith.constant 0 : index
    %22 = vector.load %arg7[%c0_18, %c0_19] : memref<32x256xbf16, #tpu.memory_space<vmem>>, vector<32x256xbf16>
    %cst_20 = arith.constant dense<0.000000e+00> : vector<2x256xf32>
    %23 = tpu.matmul %21, %22, %cst_20 {dimension_numbers = #tpu.dot_dimension_numbers<[1], [0], [0], [1], [0, 0, 1, 1], [], []>} : vector<2x32xbf16>, vector<32x256xbf16>, vector<2x256xf32> -> vector<2x256xf32>
    %24 = arith.addf %20, %23 : vector<2x256xf32>
    %c0_21 = arith.constant 0 : index
    %c0_22 = arith.constant 0 : index
    %25 = vector.load %arg8[%c0_21, %c0_22] : memref<1x256xf32, #tpu.memory_space<vmem>>, vector<1x256xf32>
    %26 = vector.broadcast %25 : vector<1x256xf32> to vector<2x256xf32>
    %27 = arith.addf %24, %26 : vector<2x256xf32>
    %cst_23 = arith.constant 0.000000e+00 : f32
    %28 = vector.broadcast %cst_23 : f32 to vector<2x256xf32>
    %29 = arith.maximumf %27, %28 : vector<2x256xf32>
    %30 = arith.truncf %29 : vector<2x256xf32> to vector<2x256xbf16>
    %c0_24 = arith.constant 0 : index
    %c0_25 = arith.constant 0 : index
    %31 = vector.load %arg9[%c0_24, %c0_25] : memref<256x128xbf16, #tpu.memory_space<vmem>>, vector<256x128xbf16>
    %cst_26 = arith.constant dense<0.000000e+00> : vector<2x128xf32>
    %32 = tpu.matmul %30, %31, %cst_26 {dimension_numbers = #tpu.dot_dimension_numbers<[1], [0], [0], [1], [0, 0, 1, 1], [], []>} : vector<2x256xbf16>, vector<256x128xbf16>, vector<2x128xf32> -> vector<2x128xf32>
    %c0_27 = arith.constant 0 : index
    %c0_28 = arith.constant 0 : index
    %33 = vector.load %arg10[%c0_27, %c0_28] : memref<1x128xf32, #tpu.memory_space<vmem>>, vector<1x128xf32>
    %34 = vector.broadcast %33 : vector<1x128xf32> to vector<2x128xf32>
    %35 = arith.addf %32, %34 : vector<2x128xf32>
    %c0_29 = arith.constant 0 : index
    %c0_30 = arith.constant 0 : index
    %36 = vector.load %arg12[%c0_29, %c0_30] : memref<2x128xf32, #tpu.memory_space<vmem>>, vector<2x128xf32>
    tpu.vector_store %arg12[%c0_29, %c0_30], %35 {strides = array<i32>} : memref<2x128xf32, #tpu.memory_space<vmem>>, vector<2x128xf32>,
    return
  }
}

</mosaic_0001>

<bundles_post_ra>
// kernel: soilnet_forward.1
= control target key start
LH: loop header
LB: loop body
LE: loop exit
PB: predicated region body
PF: predicated region fallthrough
CT: control target
= control target key end

     0   :  { %v1047_v1 = vmov 0   ;;  %vm212_vm0 = vcmask 1044480   ;;  %vm213_vm1 = vcmask 1045504   ;;  %v1048_v3 = vmov 65535   ;;  %s1324_s0 = inlined_call_operand.vmem [shape: f32[2,27], index: 0, kind: input, shape index: {}]   ;;  %s1325_s1 = inlined_call_operand.vmem [shape: f32[2,1], index: 1, kind: input, shape index: {}]   ;;  %s1326_s2 = inlined_call_operand.vmem [shape: bf16[27,1280], index: 2, kind: input, shape index: {}]   ;;  %s1327_s3 = inlined_call_operand.vmem [shape: f32[1,1280], index: 3, kind: input, shape index: {}]   ;;  %s1328_s4 = inlined_call_operand.vmem [shape: f32[1,32], index: 4, kind: input, shape index: {}]   ;;  %s1329_s5 = inlined_call_operand.vmem [shape: f32[1,32], index: 5, kind: input, shape index: {}]   ;;  %s1330_s6 = inlined_call_operand.vmem [shape: bf16[27,256], index: 6, kind: input, shape index: {}]   ;;  %s1331_s7 = inlined_call_operand.vmem [shape: bf16[32,256], index: 7, kind: input, shape index: {}]   ;;  %s1332_s8 = inlined_call_operand.vmem [shape: f32[1,256], index: 8, kind: input, shape index: {}]   ;;  %s1333_s9 = inlined_call_operand.vmem [shape: bf16[256,128], index: 9, kind: input, shape index: {}]   ;;  %s1334_s10 = inlined_call_operand.vmem [shape: f32[1,128], index: 10, kind: input, shape index: {}]   ;;  %s1335_s11 = inlined_call_operand.hbm [shape: f32[2,1312], index: 11, kind: output, shape index: {0}]   ;;  %s1336_s12 = inlined_call_operand.vmem [shape: f32[2,128], index: 12, kind: output, shape index: {1}]  }
   0x1   :  { %v451_v0 = vld [vmem:[%s1325_s1] sm:$0x3]  ;;  %966 = vset.pattern.permute.xlu0 %v1047_v1  ;;  %v967_v2 = vld [vmem:[%s1326_s2 + $0x54] ss:$40 sps:$4 sm:$0x3f]   ;;  %278 = vmatprep.mubr.bf16.mxu0 %v1047_v1  ;;  %v214_v4 = vsel %vm212_vm0, 4294967295, %v1048_v3 }
   0x2   :  { %455 = vperm.xlu0 %966, %v451_v0   ;;  %v969_v5 = vld [vmem:[%s1326_s2 + $0x50] ss:$40 sps:$4 sm:$0x3f]   ;;  %401 = vmatprep.mubr.bf16.mxu1 %v1047_v1  ;;  %v1128_v6 = vsel %vm213_vm1, %v214_v4, 0  ;;  %v970_v9 = vld [vmem:[%s1326_s2 + $0x4] ss:$40 sps:$4 sm:$0xff]  }
   0x3   :  { %v220_v7 = vand.u32 %v967_v2, %v1128_v6  ;;  %v217_v8 = vand.u32 %v969_v5, %v1128_v6  ;;  %v972_v10 = vld [vmem:[%s1326_s2] ss:$40 sps:$4 sm:$0xff]   ;;  %v975_v11 = vld [vmem:[%s1326_s2 + $0x5c] ss:$40 sps:$4 sm:$0x3f]   ;;  %vm208_vm2 = vcmask 220160  }
   0x4   :  { %v42_v12 = vld [vmem:[%s1324_s0] sm:$0x3]  ;;  %v226_v14 = vand.u32 %v975_v11, %v1128_v6  ;;  %v978_v16 = vld [vmem:[%s1326_s2 + $0xc] ss:$40 sps:$4 sm:$0xff]   ;;  %v988_v23 = vld [vmem:[%s1326_s2 + $0x1c] ss:$40 sps:$4 sm:$0xff]  }
   0x5   :  { %258 = vmatprep.subr.bf16.mxu0 %v220_v7  ;;  %v973_v13 = vld [vmem:[%s1326_s2 + $0x58] ss:$40 sps:$4 sm:$0x3f]   ;;  %v1148_v15 = vpack.c.bf16 %v42_v12, %v42_v12  ;;  %v985_v18 = vld [vmem:[%s1326_s2 + $0x6c] ss:$40 sps:$4 sm:$0x3f]  }
   0x6   :  { %259 = vmatpush1.bf16.msra.mxu0 %v217_v8  ;;  %v223_v17 = vand.u32 %v973_v13, %v1128_v6  ;;  %v987_v19 = vld [vmem:[%s1326_s2 + $0x68] ss:$40 sps:$4 sm:$0x3f]   ;;  %v981_v20 = vld [vmem:[%s1326_s2 + $0x64] ss:$40 sps:$4 sm:$0x3f]   ;;  %v238_v21 = vand.u32 %v985_v18, %v1128_v6 }
   0x7   :  { %260 = vmatprep.subr.bf16.mxu0 %v970_v9  ;;  %v235_v22 = vand.u32 %v987_v19, %v1128_v6  ;;  %v976_v24 = vld [vmem:[%s1326_s2 + $0x8] ss:$40 sps:$4 sm:$0xff]   ;;  %v232_v26 = vand.u32 %v981_v20, %v1128_v6  ;;  %v993_v27 = vld [vmem:[%s1326_s2 + $0x18] ss:$40 sps:$4 sm:$0xff]   ;;  %v984_v29 = vld [vmem:[%s1326_s2 + $0x14] ss:$40 sps:$4 sm:$0xff]  }
   0x8   :  { %v979_v25 = vld [vmem:[%s1326_s2 + $0x60] ss:$40 sps:$4 sm:$0x3f]   ;;  %381 = vmatprep.subr.bf16.mxu1 %v238_v21  ;;  %v992_v30 = vld [vmem:[%s1326_s2 + $0x74] ss:$40 sps:$4 sm:$0x3f]  }
   0x9   :  { %382 = vmatpush1.bf16.msra.mxu1 %v235_v22  ;;  %v229_v28 = vand.u32 %v979_v25, %v1128_v6  ;;  %v1005_v31 = vld [vmem:[%s1331_s7 + $0x14] ss:$8 sps:$4 sm:$0xff]   ;;  %v982_v32 = vld [vmem:[%s1326_s2 + $0x10] ss:$40 sps:$4 sm:$0xff]   ;;  %v1008_v35 = vld [vmem:[%s1331_s7 + $0x4] ss:$8 sps:$4 sm:$0xff]   ;;  %v244_v37 = vand.u32 %v992_v30, %v1128_v6 }
   0xa   :  { %261 = vmatpush1.bf16.msra.mxu0 %v972_v10  ;;  %383 = vmatprep.subr.bf16.mxu1 %v988_v23  ;;  %v990_v33 = vld [vmem:[%s1326_s2 + $0x70] ss:$40 sps:$4 sm:$0x3f]   ;;  %v1006_v36 = vld [vmem:[%s1331_s7] ss:$8 sps:$4 sm:$0xff]  }
   0xb   :  { %299 = vmatprep.subr.bf16.mxu0 %v226_v14  ;;  %v1003_v34 = vld [vmem:[%s1331_s7 + $0x10] ss:$8 sps:$4 sm:$0xff]   ;;  %v996_v38 = vld [vmem:[%s1326_s2 + $0x24] ss:$40 sps:$4 sm:$0xff]   ;;  %v241_v40 = vand.u32 %v990_v33, %v1128_v6  ;;  %v994_v41 = vld [vmem:[%s1326_s2 + $0x20] ss:$40 sps:$4 sm:$0xff]  }
   0xc   :  { %v999_v39 = vld [vmem:[%s1330_s6 + $0x14] ss:$8 sps:$4 sm:$0x3f]   ;;  %v997_v42 = vld [vmem:[%s1330_s6 + $0x10] ss:$8 sps:$4 sm:$0x3f]  }
   0xd   :  { %905 = vmatmul.mubr.msk.bf16.vlgmr.msra.gmra.mxu0 %vm208_vm2, %v1148_v15  ;;  %384 = vmatpush1.bf16.msra.mxu1 %v993_v27  ;;  %v630_v43 = vand.u32 %v999_v39, %v1128_v6 }
   0xe   :  { %300 = vmatpush1.bf16.msra.mxu0 %v223_v17  ;;  %319 = vmatprep.mubr.bf16.mxu0 %v1047_v1 }
   0xf   :  { %301 = vmatprep.subr.bf16.mxu0 %v978_v16  ;;  %579 = vmatprep.subr.bf16.mxu1 %v1005_v31 }
  0x10   :  { %908 = vmatmul.mubr.msk.bf16.vlgmr.msra.gmra.mxu1 %vm208_vm2, %v1148_v15 }
  0x11   :  { %580 = vmatpush1.bf16.msra.mxu1 %v1003_v34  ;;  %599 = vmatprep.mubr.bf16.mxu1 %v1047_v1 }
  0x12   :  { %302 = vmatpush1.bf16.msra.mxu0 %v976_v24  ;;  %581 = vmatprep.subr.bf16.mxu1 %v1008_v35 }
  0x13   :  { %340 = vmatprep.subr.bf16.mxu0 %v232_v26 }
  0x15   :  { %906 = vmatmul.mubr.msk.bf16.vlgmr.msra.gmra.mxu0 %vm208_vm2, %v1148_v15  ;;  %582 = vmatpush1.bf16.msra.mxu1 %v1006_v36 }
  0x16   :  { %341 = vmatpush1.bf16.msra.mxu0 %v229_v28  ;;  %360 = vmatprep.mubr.bf16.mxu0 %v1047_v1 }
  0x17   :  { %342 = vmatprep.subr.bf16.mxu0 %v984_v29 }
  0x1a   :  { %343 = vmatpush1.bf16.msra.mxu0 %v982_v32 }
  0x1b   :  { %422 = vmatprep.subr.bf16.mxu0 %v244_v37 }
  0x1d   :  { %907 = vmatmul.mubr.msk.bf16.vlgmr.msra.gmra.mxu0 %vm208_vm2, %v1148_v15 }
  0x1e   :  { %423 = vmatpush1.bf16.msra.mxu0 %v241_v40  ;;  %442 = vmatprep.mubr.bf16.mxu0 %v1047_v1 }
  0x1f   :  { %424 = vmatprep.subr.bf16.mxu0 %v996_v38 }
  0x20   :  { %18 = vsyncpa [#allocation3], 0  ;;  %v627_v44 = vand.u32 %v997_v42, %v1128_v6  ;;  %v1002_v45 = vld [vmem:[%s1330_s6 + $0x4] ss:$8 sps:$4 sm:$0xff]   ;;  %v1000_v46 = vld [vmem:[%s1330_s6] ss:$8 sps:$4 sm:$0xff]   ;;  %v68_v0 = vlaneseq }
  0x21   :  { %v1009_v47 = vld [vmem:[%s1333_s9 + $0x78] sm:$0xff]   ;;  %v910_v48 = vld [vmem:[%s1328_s4] ss:$0 sm:$0xff]  ;;  %vm532_vm3 = vcmask 254976   ;;  %vm563_vm4 = vcmask 261120   ;;  %v1011_v56 = vld [vmem:[%s1333_s9 + $0x70] sm:$0xff]  }
  0x22   :  { %425 = vmatpush1.bf16.msra.mxu0 %v994_v41  ;;  %940 = vmatprep.subr.bf16.mxu1 %v1009_v47  ;;  %v911_v49 = vld [vmem:[%s1329_s5] ss:$0 sm:$0xff]  ;;  %v1010_v54 = vld [vmem:[%s1333_s9 + $0x38] sm:$0xff]   ;;  %v1012_v57 = vld [vmem:[%s1333_s9 + $0x30] sm:$0xff]   ;;  %v69_v3 = vshrl.u32 %v68_v0, 7  ;;  %s1050_s30 = smov [#allocation2]  }
  0x23   :  { %644 = vmatprep.subr.bf16.mxu0 %v630_v43  ;;  %v1013_v58 = vld [vmem:[%s1333_s9 + $0x68] sm:$0xff]   ;;  %v1015_v60 = vld [vmem:[%s1333_s9 + $0x60] sm:$0xff]   ;;  %v1017_v62 = vld [vmem:[%s1333_s9 + $0x58] sm:$0xff]   ;;  %v1049_v12 = vmov 1983009808  }
  0x24   :  { %v1014_v59 = vld [vmem:[%s1333_s9 + $0x28] sm:$0xff]   ;;  %v1016_v61 = vld [vmem:[%s1333_s9 + $0x20] sm:$0xff]   ;;  %v1018_v63 = vld [vmem:[%s1333_s9 + $0x18] sm:$0xff]   ;;  %v1290_v6 = vsub.s32 0, %v69_v3  ;;  %v1292_v7 = vsub.s32 1, %v69_v3  ;;  %v487_v13 = vunpack.c.l.s4 %v1049_v12  ;;  %v78_v14 = vsub.s32 2, %v69_v3 }
  0x25   :  { %909 = vmatmul.mubr.msk.bf16.vlgmr.msra.gmra.mxu0 %vm208_vm2, %v1148_v15  ;;  %v1020_v2 = vld [vmem:[%s1333_s9 + $0x10] sm:$0xff]   ;;  %v1021_v4 = vld [vmem:[%s1333_s9 + $0x48] sm:$0xff]   ;;  %v64_v8 = vld [vmem:[%s1327_s3] sm:$0xff]  ;;  %v82_v18 = vsub.s32 3, %v69_v3  ;;  %v94_v24 = vsub.s32 6, %v69_v3  ;;  %v98_v25 = vsub.s32 7, %v69_v3 }
  0x26   :  { %645 = vmatpush1.bf16.msra.mxu0 %v627_v44  ;;  %664 = vmatprep.mubr.bf16.mxu0 %v1047_v1  ;;  %v1019_v1 = vld [vmem:[%s1333_s9 + $0x50] sm:$0xff]   ;;  %v1022_v5 = vld [vmem:[%s1333_s9 + $0x8] sm:$0xff]   ;;  %v1023_v9 = vld [vmem:[%s1333_s9 + $0x40] sm:$0xff]   ;;  %v75_v16 = vrot.slane %v64_v8, %v1292_v7  ;;  %v488_v19 = vunpack.c.0.s8 %v487_v13  ;;  %v79_v21 = vrot.slane %v64_v8, %v78_v14  ;;  %v86_v30 = vsub.s32 4, %v69_v3 }
  0x27   :  { %646 = vmatprep.subr.bf16.mxu0 %v1002_v45  ;;  %v1024_v10 = vld [vmem:[%s1333_s9] sm:$0xff]   ;;  %v83_v27 = vrot.slane %v64_v8, %v82_v18  ;;  %v95_v33 = vrot.slane %v64_v8, %v94_v24  ;;  %v99_v34 = vrot.slane %v64_v8, %v98_v25  ;;  %v90_v38 = vsub.s32 5, %v69_v3 }
  0x28   :  { %v491_v28 = vsub.s32 %v488_v19, %v69_v3  ;;  %v87_v40 = vrot.slane %v64_v8, %v86_v30 }
  0x2a   :  { %647 = vmatpush1.bf16.msra.mxu0 %v1000_v46 }
  0x2d   :  { %922 = vmatmul.mubr.msk.bf16.vlgmr.msra.gmra.mxu0 %vm208_vm2, %v1148_v15  ;;  %v71_v15 = vrot.slane %v64_v8, %v1290_v6 }
  0x7d   :  { %v456_v50 = vpop.permute.xlu0 %455 }
  0x7e   :  { %v464_v51 = vmul.f32 %v910_v48, %v456_v50 }
  0x80   :  { %v472_v52 = vadd.f32 %v911_v49, %v464_v51  ;;  %v91_v49 = vrot.slane %v64_v8, %v90_v38 }
  0x82   :  { %v473_v53 = vmax.f32 %v472_v52, 0.0 }
  0x84   :  { %533 = vst.msk [vmem:[#allocation2 + $0x14] sm:$0x3] %vm532_vm3, %v473_v53  ;;  %v538_v55 = vpack.c.bf16 %v473_v53, %v473_v53 }
  0x86   :  { %917 = vmatmul.mubr.msk.bf16.vlgmr.msra.gmra.mxu1 %vm563_vm4, %v538_v55 }
  0x87   :  { %941 = vmatpush3.bf16.msra.mxu1 %v1010_v54 }
  0x88   :  { %942 = vmatprep.subr.bf16.mxu1 %v1011_v56  ;;  %v65_v56 = vld [vmem:[%s1327_s3 + $0x8] sm:$0x3] }
  0x89   :  { %v107_v0 = vrot.slane %v65_v56, %v1292_v7 }
  0x8b   :  { %943 = vmatpush3.bf16.msra.mxu1 %v1012_v57 }
  0x8c   :  { %944 = vmatprep.subr.bf16.mxu1 %v1013_v58 }
  0x8f   :  { %945 = vmatpush3.bf16.msra.mxu1 %v1014_v59 }
  0x90   :  { %946 = vmatprep.subr.bf16.mxu1 %v1015_v60 }
  0x93   :  { %947 = vmatpush3.bf16.msra.mxu1 %v1016_v61  ;;  %v103_v61 = vrot.slane %v65_v56, %v1290_v6 }
  0x94   :  { %948 = vmatprep.subr.bf16.mxu1 %v1017_v62 }
  0x97   :  { %949 = vmatpush3.bf16.msra.mxu1 %v1018_v63 }
  0x98   :  { %950 = vmatprep.subr.bf16.mxu1 %v1019_v1 }
  0x9b   :  { %951 = vmatpush3.bf16.msra.mxu1 %v1020_v2 }
  0x9c   :  { %952 = vmatprep.subr.bf16.mxu1 %v1021_v4 }
  0x9f   :  { %953 = vmatpush3.bf16.msra.mxu1 %v1022_v5 }
  0xa0   :  { %954 = vmatprep.subr.bf16.mxu1 %v1023_v9 }
  0xa3   :  { %955 = vmatpush3.bf16.msra.mxu1 %v1024_v10 }
  0xcd   :  { %v280_v11 = vpop.f32.mrf.mxu0 }
  0xce   :  { %v281_v22 = vadd.f32 %v280_v11, %v71_v15  ;;  %v673_v15 = vld [vmem:[%s1332_s8] sm:$0x3]  ;;  %s873_s8 = sshll.u32 %s1050_s30, 4  ;;  %s874_s8 = int_to_ptr.vmem [resolvable:$true] %s873_s8 }
  0xcf   :  { %v282_v17 = vpop.f32.mrf.mxu0  ;;  %v682_v19 = vrot.slane %v673_v15, %v1292_v7  ;;  %s1025_s13 = scalar_lea.vmem %s874_s8, 352  ;;  %p1030_p1 = scmp.lt.s32.totalorder %s874_s8, %s874_s8 }
  0xd0   :  { %v283_v23 = vadd.f32 %v282_v17, %v75_v16  ;;  %v403_v36 = vpop.f32.mrf.mxu1  ;;  %v678_v16 = vrot.slane %v673_v15, %v1290_v6  ;;  %p1026_p0 = scmp.ne.s32.totalorder %s874_s8, %s1025_s13  ;;  %p1031_p2 = scmp.lt.s32.totalorder %s1025_s13, %s1025_s13 }
  0xd1   :  { %v284_v20 = vpop.f32.mrf.mxu0  ;;  %v404_v44 = vadd.f32 %v403_v36, %v95_v33 }
  0xd2   :  { %v484_v31 = vcombine.low %v281_v22, %v283_v23  ;;  %v405_v41 = vpop.f32.mrf.mxu1  ;;  %p1032_p3 = por %p1031_p2, %p1030_p1 }
  0xd3   :  { %v285_v26 = vpop.f32.mrf.mxu0  ;;  %v406_v45 = vadd.f32 %v405_v41, %v99_v34 }
  0xd4   :  { %v492_v42 = vrot.slane %v484_v31, %v491_v28  ;;  %v407_v47 = vpop.f32.mrf.mxu1  ;;  %p1033_p4 = pnand %p1032_p3, %p1026_p0 }
  0xd5   :  { %v321_v29 = vpop.f32.mrf.mxu0  ;;  %v502_v54 = vcombine.low %v404_v44, %v406_v45 }
  0xd6   :  { %v322_v32 = vadd.f32 %v321_v29, %v79_v21  ;;  %v408_v51 = vpop.f32.mrf.mxu1 }
  0xd7   :  { %v323_v35 = vpop.f32.mrf.mxu0  ;;  %v516_v60 = vrot.slane %v502_v54, %v491_v28 }
  0xd8   :  { %v324_v37 = vadd.f32 %v323_v35, %v83_v27 }
  0xd9   :  { %v325_v39 = vpop.f32.mrf.mxu0 }
  0xda   :  { %v485_v43 = vcombine.low %v322_v32, %v324_v37 }
  0xdb   :  { %v326_v46 = vpop.f32.mrf.mxu0 }
  0xdc   :  { %v499_v48 = vrot.slane %v485_v43, %v491_v28 }
  0xdd   :  { %v362_v50 = vpop.f32.mrf.mxu0 }
  0xde   :  { %v500_v52 = vcombine.low %v492_v42, %v499_v48  ;;  %v363_v53 = vadd.f32 %v362_v50, %v87_v40 }
  0xdf   :  { %v364_v55 = vpop.f32.mrf.mxu0 }
  0xe0   :  { %529 = vst [vmem:[#allocation2] sm:$0xff] %v500_v52  ;;  %v365_v57 = vadd.f32 %v364_v55, %v91_v49 }
  0xe1   :  { %v366_v58 = vpop.f32.mrf.mxu0 }
  0xe2   :  { %v501_v59 = vcombine.low %v363_v53, %v365_v57 }
  0xe3   :  { %v367_v62 = vpop.f32.mrf.mxu0 }
  0xe4   :  { %v509_v63 = vrot.slane %v501_v59, %v491_v28 }
  0xe5   :  { %v444_v1 = vpop.f32.mrf.mxu0 }
  0xe6   :  { %v517_v2 = vcombine.low %v509_v63, %v516_v60  ;;  %v445_v3 = vadd.f32 %v444_v1, %v103_v61 }
  0xe7   :  { %v446_v4 = vpop.f32.mrf.mxu0 }
  0xe8   :  { %530 = vst [vmem:[#allocation2 + $0x8] sm:$0xff] %v517_v2  ;;  %v447_v5 = vadd.f32 %v446_v4, %v107_v0 }
  0xe9   :  { %v448_v8 = vpop.f32.mrf.mxu0 }
  0xea   :  { %v518_v9 = vcombine.low %v445_v3, %v447_v5 }
  0xeb   :  { %v449_v10 = vpop.f32.mrf.mxu0 }
  0xec   :  { %912 = vst.sshfl [vmem:[#allocation2 + $0x10] sm:$0x33 pattern:$0x76325410] %v518_v9 }
  0xed   :  { %v666_v11 = vpop.f32.mrf.mxu0 }
  0xef   :  { %v668_v12 = vpop.f32.mrf.mxu0 }
  0xf1   :  { %v670_v13 = vpop.f32.mrf.mxu0 }
  0xf3   :  { %v671_v14 = vpop.f32.mrf.mxu0 }
 0x146   :  { %v601_v17 = vpop.f32.mrf.mxu1 }
 0x147   :  { %v667_v18 = vadd.f32 %v666_v11, %v601_v17 }
 0x148   :  { %v603_v20 = vpop.f32.mrf.mxu1 }
 0x149   :  { %v685_v21 = vadd.f32 %v678_v16, %v667_v18  ;;  %v669_v22 = vadd.f32 %v668_v12, %v603_v20 }
 0x14a   :  { %v605_v23 = vpop.f32.mrf.mxu1 }
 0x14b   :  { %v686_v24 = vadd.f32 %v682_v19, %v669_v22  ;;  %v687_v25 = vmax.f32 %v685_v21, 0.0 }
 0x14c   :  { %v606_v26 = vpop.f32.mrf.mxu1 }
 0x14d   :  { %v688_v27 = vmax.f32 %v686_v24, 0.0  ;;  %v689_v29 = vpack.c.bf16 %v687_v25, %v687_v25 }
 0x14f   :  { %v690_v28 = vpack.c.bf16 %v688_v27, %v688_v27 }
 0x151   :  { %858 = vmatprep.mubr.bf16.mxu1 %v690_v28 }
 0x152   :  { %859 = vmatmul.mubr.bf16.vlgmr.msra.gmra.mxu1 %v689_v29 }
 0x153   :  { %1036 = shalt.err (!%p1033_p4)
}
 0x154   :  { %876 = dma.vmem_to_hbm [thread:$0]  %s874_s8, 352, %s1335_s11, [#allocation3]   ;;  %v923_v7 = vld [vmem:[%s1334_s10] ss:$0 sm:$0xff] }
 0x212   :  { %v956_v6 = vpop.f32.mrf.mxu1 }
 0x214   :  { %v957_v30 = vpop.f32.mrf.mxu1 }
 0x215   :  { %v958_v31 = vadd.f32 %v957_v30, %v956_v6 }
 0x216   :  { %v959_v32 = vpop.f32.mrf.mxu1 }
 0x217   :  { %v861_v33 = vadd.f32 %v958_v31, %v923_v7 }
 0x218   :  { %v960_v34 = vpop.f32.mrf.mxu1 }
 0x219   :  { %866 = vst [vmem:[%s1336_s12] sm:$0x3] %v861_v33 }
 0x21a   :  { %1045 = dma.done.wait [#allocation3], 352  }
 0x21b   :  { %1046 = vsyncadd [#allocation3], 4294966944 }
 0x21c   :  { %884 = vsyncpa [#allocation3], 1 }

</bundles_post_ra>
